<compile_context>
chip_gen: v5e
topology: v5e:2x2
jax: 0.10.0
libtpu: 0.0.40
codegen_flags: <defaults>
</compile_context>

<pallas_src>
import jax
import jax.numpy as jnp
from jax.experimental import pallas as pl
from jax.experimental.pallas import tpu as pltpu


def _round_up(x, m):
    return ((x + m - 1) // m) * m


def _detect_num_tensorcores():
    """2 TensorCores per JAX device on v4 / v5p / 7x class parts, else 1."""
    try:
        kind = jax.devices()[0].device_kind.lower()
    except Exception:
        return 1
    if any(tag in kind for tag in ("v4", "v5p", "7")):
        return 2
    return 1


def _xent_kernel(logits_ref, tgt_ref, out_sum_ref, out_cnt_ref, sum_acc, cnt_acc):
    i = pl.program_id(1)                 # row super-tile (reduction) axis
    n_sub, sub_rows = tgt_ref.shape      # (8, sub_rows): one sublane per sub-tile
    c_pad = logits_ref.shape[0]

    @pl.when(i == 0)
    def _():
        sum_acc[...] = jnp.zeros_like(sum_acc)
        cnt_acc[...] = jnp.zeros_like(cnt_acc)

    # Narrow (c_pad, 1) class-id iota, hoisted out of the sub-tile loop.
    class_ids = jax.lax.broadcasted_iota(jnp.int32, (c_pad, 1), 0)

    # Accumulate the 8 sub-tiles locally; single RMW of the VMEM accumulators
    # per super-tile (fewer stores -> kinder to v5e's single vst slot).
    nll_part = sum_acc[...]
    cnt_part = cnt_acc[...]

    for j in range(n_sub):  # static unroll: all slices are static
        logits = logits_ref[:, pl.ds(j * sub_rows, sub_rows)].astype(jnp.float32)
        tgt = tgt_ref[pl.ds(j, 1), :]                                # (1, sub) int32

        # Numerically-stable log-softmax over the sublane (class) axis.
        col_max = jnp.max(logits, axis=0, keepdims=True)             # (1, sub)
        # Row filter: whole row is -inf (padding row) or ignore_index target.
        valid = jnp.logical_and(col_max != -jnp.inf, tgt != -1)      # (1, sub)
        safe_max = jnp.where(col_max == -jnp.inf, 0.0, col_max)      # narrow fixup
        shifted = logits - safe_max                                  # (c_pad, sub)
        sumexp = jnp.sum(jnp.exp(shifted), axis=0, keepdims=True)    # (1, sub)

        # Target gather via one-hot select on the class axis; gathering from
        # `shifted` makes the column max cancel out of the nll.
        tgt_shifted = jnp.sum(jnp.where(class_ids == tgt, shifted, 0.0),
                              axis=0, keepdims=True)                 # (1, sub)

        nll = jnp.log(sumexp) - tgt_shifted                          # (1, sub)

        # select (never inf*0) so invalid rows contribute exactly 0.
        nll_part = nll_part + jnp.where(valid, nll, 0.0)
        cnt_part = cnt_part + valid.astype(jnp.float32)

    sum_acc[...] = nll_part
    cnt_acc[...] = cnt_part

    @pl.when(i == pl.num_programs(1) - 1)
    def _():
        out_sum_ref[...] = jnp.full(out_sum_ref.shape, jnp.sum(sum_acc[...]),
                                    jnp.float32)
        out_cnt_ref[...] = jnp.full(out_cnt_ref.shape, jnp.sum(cnt_acc[...]),
                                    jnp.float32)


def label_loss_pallas(logits, target_ids, *, num_cores=None, max_tile_rows=65536):
    """Mean cross-entropy over valid rows.

    logits: [N, C] float (f32 or bf16); target_ids: [N] int, -1 = ignored row.
    Rows that are entirely -inf (padding rows) are dropped, matching the
    PyTorch `flat_logits` filter for whole-row padding.
    """
    N, C = logits.shape
    itemsize = jnp.dtype(logits.dtype).itemsize
    sub_gran = {4: 8, 2: 16}.get(itemsize, 8)   # dtype-aware sublane packing
    c_pad = _round_up(C, sub_gran)

    if num_cores is None:
        num_cores = _detect_num_tensorcores()

    # --- VMEM budget / tile sizing ------------------------------------------
    try:
        vmem_cap = pltpu.get_tpu_info().vmem_capacity_bytes
    except Exception:
        vmem_cap = 64 * 1024 * 1024             # conservative (v7x) fallback
    budget = min(vmem_cap // 2, 48 * 1024 * 1024)

    # Honest per-row (per super-tile row) VMEM bytes:
    #   double-buffered logits tile           : 2 * c_pad * itemsize
    #   double-buffered packed int32 targets  : 2 * 4
    #   two (1, sub) f32 accumulators (8x pad): 2 * 4
    #   ~4 full-width f32 sub-tile temporaries: 4 * 4 * c_pad / 8
    #   misc (1, sub) f32 temporaries         : ~16
    bytes_per_row = (2 * c_pad * itemsize) + 8 + 8 + (2 * c_pad) + 16

    SUPER = 8 * 128                              # 8 sub-tiles x 128 lanes
    rows_per_core = -(-N // num_cores)
    tile_rows = budget // bytes_per_row
    tile_rows = min(tile_rows, max_tile_rows, _round_up(rows_per_core, SUPER))
    tile_rows = max(SUPER, (tile_rows // SUPER) * SUPER)
    sub_rows = tile_rows // 8
    num_tiles = -(-rows_per_core // tile_rows)
    num_global = num_cores * num_tiles
    n_pad = num_global * tile_rows

    working_set = bytes_per_row * tile_rows
    vmem_limit = int(min(max(2 * working_set + (4 << 20), 8 << 20),
                         (vmem_cap * 3) // 4))

    # --- Input layout ---------------------------------------------------------
    # Lane-dense layout: classes -> sublanes, rows -> lanes.  Padded classes and
    # padded rows use true -inf (exp(-inf - max) == 0; masking is select-based).
    logits_t = jnp.pad(jnp.transpose(logits),
                       ((0, c_pad - C), (0, n_pad - N)),
                       constant_values=-jnp.inf)

    # Pack targets so every sublane is meaningful (4 B/row of HBM instead of
    # 32 B/row): sublane j of super-tile g holds targets of sub-tile j.
    targets = jnp.pad(target_ids.astype(jnp.int32), (0, n_pad - N),
                      constant_values=-1)
    targets = (targets.reshape(num_global, 8, sub_rows)
                      .transpose(1, 0, 2)
                      .reshape(8, num_global * sub_rows))

    grid_spec = pltpu.PrefetchScalarGridSpec(
        num_scalar_prefetch=0,
        grid=(num_cores, num_tiles),
        in_specs=[
            pl.BlockSpec((c_pad, tile_rows), lambda p, i: (0, p * num_tiles + i)),
            pl.BlockSpec((8, sub_rows), lambda p, i: (0, p * num_tiles + i)),
        ],
        out_specs=[
            pl.BlockSpec((1, 8, 128), lambda p, i: (p, 0, 0)),
            pl.BlockSpec((1, 8, 128), lambda p, i: (p, 0, 0)),
        ],
        scratch_shapes=[
            pltpu.VMEM((1, sub_rows), jnp.float32),  # per-lane nll partial sums
            pltpu.VMEM((1, sub_rows), jnp.float32),  # per-lane valid-row counts
        ],
    )

    out_sum, out_cnt = pl.pallas_call(
        _xent_kernel,
        out_shape=(jax.ShapeDtypeStruct((num_cores, 8, 128), jnp.float32),
                   jax.ShapeDtypeStruct((num_cores, 8, 128), jnp.float32)),
        grid_spec=grid_spec,
        compiler_params=pltpu.CompilerParams(
            dimension_semantics=("parallel", "arbitrary"),
            vmem_limit_bytes=vmem_limit,
        ),
        cost_estimate=pl.CostEstimate(
            flops=12 * n_pad * c_pad,
            transcendentals=n_pad * (c_pad + 1),
            bytes_accessed=n_pad * c_pad * itemsize + n_pad * 4
                           + 2 * num_cores * 8 * 128 * 4,
        ),
    )(logits_t, targets)

    # Per-core (sum, count) partials; final mean in the wrapper.
    # (0/0 -> NaN if no row is valid, matching CrossEntropyLoss-all-ignored.)
    return out_sum[:, 0, 0].sum() / out_cnt[:, 0, 0].sum()


def _ref_loss(logits, target_ids):
    """Pure-JAX reference matching PyTorch semantics (whole-row padding)."""
    row_sum = jnp.sum(logits, axis=-1)
    valid = jnp.logical_and(row_sum != -jnp.inf, target_ids != -1)
    safe = jnp.where(valid[:, None], logits, 0.0)
    logp = jax.nn.log_softmax(safe, axis=-1)
    nll = -jnp.take_along_axis(logp, jnp.maximum(target_ids, 0)[:, None], axis=-1)[:, 0]
    return jnp.sum(jnp.where(valid, nll, 0.0)) / jnp.sum(valid.astype(jnp.float32))


if __name__ == "__main__":
    # Deterministic synthetic setup (mirrors LabelLoss(classes=...)).
    classes = ["cat", "dog", "bird", "fish", "frog", "horse", "sheep", "cow"]
    class2id = {c: i for i, c in enumerate(classes)}
    C = len(classes)          # 8 classes
    N = 16                    # 16 rows of logits

    key = jax.random.PRNGKey(0)
    k_logits, k_tgt = jax.random.split(key)

    logits = jax.random.normal(k_logits, (N, C), dtype=jnp.float32)

    # Mark some rows as "padded" the PyTorch way: whole row -inf.
    pad_rows = jnp.array([3, 7, 12])
    logits = logits.at[pad_rows].set(-jnp.inf)

    # Targets: random class names for valid rows, -1 (ignore) for padded rows.
    tgt_names = [classes[int(t)] for t in jax.random.randint(k_tgt, (N,), 0, C)]
    target_ids = jnp.array(
        [-1 if i in (3, 7, 12) else class2id[tgt_names[i]] for i in range(N)],
        dtype=jnp.int32,
    )

    loss = jax.block_until_ready(label_loss_pallas(logits, target_ids))
    ref = jax.block_until_ready(_ref_loss(logits, target_ids))

    assert jnp.allclose(loss, ref, rtol=1e-5, atol=1e-5), (loss, ref)
    print("KERNEL_OK")
</pallas_src>

<mosaic_0001>
module attributes {stable_mosaic.version = 11 : i64} {
  func.func @_xent_kernel(%arg0: i32, %arg1: i32, %arg2: memref<8x1024xf32, #tpu.memory_space<vmem>>, %arg3: memref<8x128xi32, #tpu.memory_space<vmem>>, %arg4: memref<1x8x128xf32, #tpu.memory_space<vmem>>, %arg5: memref<1x8x128xf32, #tpu.memory_space<vmem>>, %arg6: memref<1x128xf32, #tpu.memory_space<vmem>>, %arg7: memref<1x128xf32, #tpu.memory_space<vmem>>) attributes {dimension_semantics = [#tpu.dimension_semantics<parallel>, #tpu.dimension_semantics<arbitrary>], iteration_bounds = array<i64: 1, 1>, scalar_prefetch = 0 : i64, scratch_operands = 2 : i64, tpu.core_type = #tpu.core_type<tc>, window_params = [{transform_indices = @transform_0, window_bounds = array<i64: 8, 1024>}, {transform_indices = @transform_1, window_bounds = array<i64: 8, 128>}, {transform_indices = @transform_2, window_bounds = array<i64: 1, 8, 128>}, {transform_indices = @transform_3, window_bounds = array<i64: 1, 8, 128>}]} {
    %c0_i32 = arith.constant 0 : i32
    %0 = arith.cmpi eq, %arg1, %c0_i32 : i32
    %1 = arith.extui %0 : i1 to i32
    %c0_i32_0 = arith.constant 0 : i32
    %2 = arith.cmpi ne, %1, %c0_i32_0 : i32
    scf.if %2 {
      %cst_98 = arith.constant 0.000000e+00 : f32
      %275 = vector.broadcast %cst_98 : f32 to vector<1x128xf32>
      %c0_99 = arith.constant 0 : index
      %c0_100 = arith.constant 0 : index
      %276 = vector.load %arg6[%c0_99, %c0_100] : memref<1x128xf32, #tpu.memory_space<vmem>>, vector<1x128xf32>
      tpu.vector_store %arg6[%c0_99, %c0_100], %275 {strides = array<i32>} : memref<1x128xf32, #tpu.memory_space<vmem>>, vector<1x128xf32>,
      %cst_101 = arith.constant 0.000000e+00 : f32
      %277 = vector.broadcast %cst_101 : f32 to vector<1x128xf32>
      %c0_102 = arith.constant 0 : index
      %c0_103 = arith.constant 0 : index
      %278 = vector.load %arg7[%c0_102, %c0_103] : memref<1x128xf32, #tpu.memory_space<vmem>>, vector<1x128xf32>
      tpu.vector_store %arg7[%c0_102, %c0_103], %277 {strides = array<i32>} : memref<1x128xf32, #tpu.memory_space<vmem>>, vector<1x128xf32>,
    } else {
    }
    %3 = tpu.iota {dimensions = array<i32: 0>} : vector<8x1xi32>
    %c0 = arith.constant 0 : index
    %c0_1 = arith.constant 0 : index
    %4 = vector.load %arg6[%c0, %c0_1] : memref<1x128xf32, #tpu.memory_space<vmem>>, vector<1x128xf32>
    %c0_2 = arith.constant 0 : index
    %c0_3 = arith.constant 0 : index
    %5 = vector.load %arg7[%c0_2, %c0_3] : memref<1x128xf32, #tpu.memory_space<vmem>>, vector<1x128xf32>
    %c0_4 = arith.constant 0 : index
    %c0_5 = arith.constant 0 : index
    %6 = vector.load %arg2[%c0_4, %c0_5] : memref<8x1024xf32, #tpu.memory_space<vmem>>, vector<8x128xf32>
    %c0_6 = arith.constant 0 : index
    %c0_7 = arith.constant 0 : index
    %7 = vector.load %arg3[%c0_6, %c0_7] : memref<8x128xi32, #tpu.memory_space<vmem>>, vector<1x128xi32>
    %cst = arith.constant dense<0xFF800000> : vector<128xf32>
    %8 = vector.multi_reduction <maximumf>, %6, %cst [0] : vector<8x128xf32> to vector<128xf32>
    %9 = vector.shape_cast %8 : vector<128xf32> to vector<1x128xf32>
    %cst_8 = arith.constant 0xFF800000 : f32
    %10 = vector.broadcast %cst_8 : f32 to vector<1x128xf32>
    %11 = arith.cmpf one, %9, %10 : vector<1x128xf32>
    %c-1_i32 = arith.constant -1 : i32
    %12 = vector.broadcast %c-1_i32 : i32 to vector<1x128xi32>
    %13 = arith.cmpi ne, %7, %12 : vector<1x128xi32>
    %14 = arith.andi %11, %13 : vector<1x128xi1>
    %cst_9 = arith.constant 0xFF800000 : f32
    %15 = vector.broadcast %cst_9 : f32 to vector<1x128xf32>
    %16 = arith.cmpf oeq, %9, %15 : vector<1x128xf32>
    %cst_10 = arith.constant 0.000000e+00 : f32
    %17 = vector.broadcast %cst_10 : f32 to vector<1x128xf32>
    %18 = arith.select %16, %17, %9 : vector<1x128xi1>, vector<1x128xf32>
    %19 = vector.broadcast %18 : vector<1x128xf32> to vector<8x128xf32>
    %20 = arith.subf %6, %19 : vector<8x128xf32>
    %21 = math.exp %20 : vector<8x128xf32>
    %cst_11 = arith.constant dense<0.000000e+00> : vector<128xf32>
    %22 = vector.multi_reduction <add>, %21, %cst_11 [0] : vector<8x128xf32> to vector<128xf32>
    %23 = vector.shape_cast %22 : vector<128xf32> to vector<1x128xf32>
    %24 = vector.broadcast %3 : vector<8x1xi32> to vector<8x128xi32>
    %25 = vector.broadcast %7 : vector<1x128xi32> to vector<8x128xi32>
    %26 = arith.cmpi eq, %24, %25 : vector<8x128xi32>
    %cst_12 = arith.constant 0.000000e+00 : f32
    %27 = vector.broadcast %cst_12 : f32 to vector<8x128xf32>
    %28 = arith.select %26, %20, %27 : vector<8x128xi1>, vector<8x128xf32>
    %cst_13 = arith.constant dense<0.000000e+00> : vector<128xf32>
    %29 = vector.multi_reduction <add>, %28, %cst_13 [0] : vector<8x128xf32> to vector<128xf32>
    %30 = vector.shape_cast %29 : vector<128xf32> to vector<1x128xf32>
    %31 = math.log %23 : vector<1x128xf32>
    %32 = arith.subf %31, %30 : vector<1x128xf32>
    %cst_14 = arith.constant 0.000000e+00 : f32
    %33 = vector.broadcast %cst_14 : f32 to vector<1x128xf32>
    %34 = arith.select %14, %32, %33 : vector<1x128xi1>, vector<1x128xf32>
    %35 = arith.addf %4, %34 : vector<1x128xf32>
    %36 = arith.extui %14 : vector<1x128xi1> to vector<1x128xi32>
    %37 = arith.sitofp %36 : vector<1x128xi32> to vector<1x128xf32>
    %38 = arith.addf %5, %37 : vector<1x128xf32>
    %c0_15 = arith.constant 0 : index
    %c128 = arith.constant 128 : index
    %39 = vector.load %arg2[%c0_15, %c128] : memref<8x1024xf32, #tpu.memory_space<vmem>>, vector<8x128xf32>
    %c1 = arith.constant 1 : index
    %c0_16 = arith.constant 0 : index
    %40 = vector.load %arg3[%c1, %c0_16] : memref<8x128xi32, #tpu.memory_space<vmem>>, vector<1x128xi32>
    %cst_17 = arith.constant dense<0xFF800000> : vector<128xf32>
    %41 = vector.multi_reduction <maximumf>, %39, %cst_17 [0] : vector<8x128xf32> to vector<128xf32>
    %42 = vector.shape_cast %41 : vector<128xf32> to vector<1x128xf32>
    %cst_18 = arith.constant 0xFF800000 : f32
    %43 = vector.broadcast %cst_18 : f32 to vector<1x128xf32>
    %44 = arith.cmpf one, %42, %43 : vector<1x128xf32>
    %c-1_i32_19 = arith.constant -1 : i32
    %45 = vector.broadcast %c-1_i32_19 : i32 to vector<1x128xi32>
    %46 = arith.cmpi ne, %40, %45 : vector<1x128xi32>
    %47 = arith.andi %44, %46 : vector<1x128xi1>
    %cst_20 = arith.constant 0xFF800000 : f32
    %48 = vector.broadcast %cst_20 : f32 to vector<1x128xf32>
    %49 = arith.cmpf oeq, %42, %48 : vector<1x128xf32>
    %cst_21 = arith.constant 0.000000e+00 : f32
    %50 = vector.broadcast %cst_21 : f32 to vector<1x128xf32>
    %51 = arith.select %49, %50, %42 : vector<1x128xi1>, vector<1x128xf32>
    %52 = vector.broadcast %51 : vector<1x128xf32> to vector<8x128xf32>
    %53 = arith.subf %39, %52 : vector<8x128xf32>
    %54 = math.exp %53 : vector<8x128xf32>
    %cst_22 = arith.constant dense<0.000000e+00> : vector<128xf32>
    %55 = vector.multi_reduction <add>, %54, %cst_22 [0] : vector<8x128xf32> to vector<128xf32>
    %56 = vector.shape_cast %55 : vector<128xf32> to vector<1x128xf32>
    %57 = vector.broadcast %3 : vector<8x1xi32> to vector<8x128xi32>
    %58 = vector.broadcast %40 : vector<1x128xi32> to vector<8x128xi32>
    %59 = arith.cmpi eq, %57, %58 : vector<8x128xi32>
    %cst_23 = arith.constant 0.000000e+00 : f32
    %60 = vector.broadcast %cst_23 : f32 to vector<8x128xf32>
    %61 = arith.select %59, %53, %60 : vector<8x128xi1>, vector<8x128xf32>
    %cst_24 = arith.constant dense<0.000000e+00> : vector<128xf32>
    %62 = vector.multi_reduction <add>, %61, %cst_24 [0] : vector<8x128xf32> to vector<128xf32>
    %63 = vector.shape_cast %62 : vector<128xf32> to vector<1x128xf32>
    %64 = math.log %56 : vector<1x128xf32>
    %65 = arith.subf %64, %63 : vector<1x128xf32>
    %cst_25 = arith.constant 0.000000e+00 : f32
    %66 = vector.broadcast %cst_25 : f32 to vector<1x128xf32>
    %67 = arith.select %47, %65, %66 : vector<1x128xi1>, vector<1x128xf32>
    %68 = arith.addf %35, %67 : vector<1x128xf32>
    %69 = arith.extui %47 : vector<1x128xi1> to vector<1x128xi32>
    %70 = arith.sitofp %69 : vector<1x128xi32> to vector<1x128xf32>
    %71 = arith.addf %38, %70 : vector<1x128xf32>
    %c0_26 = arith.constant 0 : index
    %c256 = arith.constant 256 : index
    %72 = vector.load %arg2[%c0_26, %c256] : memref<8x1024xf32, #tpu.memory_space<vmem>>, vector<8x128xf32>
    %c2 = arith.constant 2 : index
    %c0_27 = arith.constant 0 : index
    %73 = vector.load %arg3[%c2, %c0_27] : memref<8x128xi32, #tpu.memory_space<vmem>>, vector<1x128xi32>
    %cst_28 = arith.constant dense<0xFF800000> : vector<128xf32>
    %74 = vector.multi_reduction <maximumf>, %72, %cst_28 [0] : vector<8x128xf32> to vector<128xf32>
    %75 = vector.shape_cast %74 : vector<128xf32> to vector<1x128xf32>
    %cst_29 = arith.constant 0xFF800000 : f32
    %76 = vector.broadcast %cst_29 : f32 to vector<1x128xf32>
    %77 = arith.cmpf one, %75, %76 : vector<1x128xf32>
    %c-1_i32_30 = arith.constant -1 : i32
    %78 = vector.broadcast %c-1_i32_30 : i32 to vector<1x128xi32>
    %79 = arith.cmpi ne, %73, %78 : vector<1x128xi32>
    %80 = arith.andi %77, %79 : vector<1x128xi1>
    %cst_31 = arith.constant 0xFF800000 : f32
    %81 = vector.broadcast %cst_31 : f32 to vector<1x128xf32>
    %82 = arith.cmpf oeq, %75, %81 : vector<1x128xf32>
    %cst_32 = arith.constant 0.000000e+00 : f32
    %83 = vector.broadcast %cst_32 : f32 to vector<1x128xf32>
    %84 = arith.select %82, %83, %75 : vector<1x128xi1>, vector<1x128xf32>
    %85 = vector.broadcast %84 : vector<1x128xf32> to vector<8x128xf32>
    %86 = arith.subf %72, %85 : vector<8x128xf32>
    %87 = math.exp %86 : vector<8x128xf32>
    %cst_33 = arith.constant dense<0.000000e+00> : vector<128xf32>
    %88 = vector.multi_reduction <add>, %87, %cst_33 [0] : vector<8x128xf32> to vector<128xf32>
    %89 = vector.shape_cast %88 : vector<128xf32> to vector<1x128xf32>
    %90 = vector.broadcast %3 : vector<8x1xi32> to vector<8x128xi32>
    %91 = vector.broadcast %73 : vector<1x128xi32> to vector<8x128xi32>
    %92 = arith.cmpi eq, %90, %91 : vector<8x128xi32>
    %cst_34 = arith.constant 0.000000e+00 : f32
    %93 = vector.broadcast %cst_34 : f32 to vector<8x128xf32>
    %94 = arith.select %92, %86, %93 : vector<8x128xi1>, vector<8x128xf32>
    %cst_35 = arith.constant dense<0.000000e+00> : vector<128xf32>
    %95 = vector.multi_reduction <add>, %94, %cst_35 [0] : vector<8x128xf32> to vector<128xf32>
    %96 = vector.shape_cast %95 : vector<128xf32> to vector<1x128xf32>
    %97 = math.log %89 : vector<1x128xf32>
    %98 = arith.subf %97, %96 : vector<1x128xf32>
    %cst_36 = arith.constant 0.000000e+00 : f32
    %99 = vector.broadcast %cst_36 : f32 to vector<1x128xf32>
    %100 = arith.select %80, %98, %99 : vector<1x128xi1>, vector<1x128xf32>
    %101 = arith.addf %68, %100 : vector<1x128xf32>
    %102 = arith.extui %80 : vector<1x128xi1> to vector<1x128xi32>
    %103 = arith.sitofp %102 : vector<1x128xi32> to vector<1x128xf32>
    %104 = arith.addf %71, %103 : vector<1x128xf32>
    %c0_37 = arith.constant 0 : index
    %c384 = arith.constant 384 : index
    %105 = vector.load %arg2[%c0_37, %c384] : memref<8x1024xf32, #tpu.memory_space<vmem>>, vector<8x128xf32>
    %c3 = arith.constant 3 : index
    %c0_38 = arith.constant 0 : index
    %106 = vector.load %arg3[%c3, %c0_38] : memref<8x128xi32, #tpu.memory_space<vmem>>, vector<1x128xi32>
    %cst_39 = arith.constant dense<0xFF800000> : vector<128xf32>
    %107 = vector.multi_reduction <maximumf>, %105, %cst_39 [0] : vector<8x128xf32> to vector<128xf32>
    %108 = vector.shape_cast %107 : vector<128xf32> to vector<1x128xf32>
    %cst_40 = arith.constant 0xFF800000 : f32
    %109 = vector.broadcast %cst_40 : f32 to vector<1x128xf32>
    %110 = arith.cmpf one, %108, %109 : vector<1x128xf32>
    %c-1_i32_41 = arith.constant -1 : i32
    %111 = vector.broadcast %c-1_i32_41 : i32 to vector<1x128xi32>
    %112 = arith.cmpi ne, %106, %111 : vector<1x128xi32>
    %113 = arith.andi %110, %112 : vector<1x128xi1>
    %cst_42 = arith.constant 0xFF800000 : f32
    %114 = vector.broadcast %cst_42 : f32 to vector<1x128xf32>
    %115 = arith.cmpf oeq, %108, %114 : vector<1x128xf32>
    %cst_43 = arith.constant 0.000000e+00 : f32
    %116 = vector.broadcast %cst_43 : f32 to vector<1x128xf32>
    %117 = arith.select %115, %116, %108 : vector<1x128xi1>, vector<1x128xf32>
    %118 = vector.broadcast %117 : vector<1x128xf32> to vector<8x128xf32>
    %119 = arith.subf %105, %118 : vector<8x128xf32>
    %120 = math.exp %119 : vector<8x128xf32>
    %cst_44 = arith.constant dense<0.000000e+00> : vector<128xf32>
    %121 = vector.multi_reduction <add>, %120, %cst_44 [0] : vector<8x128xf32> to vector<128xf32>
    %122 = vector.shape_cast %121 : vector<128xf32> to vector<1x128xf32>
    %123 = vector.broadcast %3 : vector<8x1xi32> to vector<8x128xi32>
    %124 = vector.broadcast %106 : vector<1x128xi32> to vector<8x128xi32>
    %125 = arith.cmpi eq, %123, %124 : vector<8x128xi32>
    %cst_45 = arith.constant 0.000000e+00 : f32
    %126 = vector.broadcast %cst_45 : f32 to vector<8x128xf32>
    %127 = arith.select %125, %119, %126 : vector<8x128xi1>, vector<8x128xf32>
    %cst_46 = arith.constant dense<0.000000e+00> : vector<128xf32>
    %128 = vector.multi_reduction <add>, %127, %cst_46 [0] : vector<8x128xf32> to vector<128xf32>
    %129 = vector.shape_cast %128 : vector<128xf32> to vector<1x128xf32>
    %130 = math.log %122 : vector<1x128xf32>
    %131 = arith.subf %130, %129 : vector<1x128xf32>
    %cst_47 = arith.constant 0.000000e+00 : f32
    %132 = vector.broadcast %cst_47 : f32 to vector<1x128xf32>
    %133 = arith.select %113, %131, %132 : vector<1x128xi1>, vector<1x128xf32>
    %134 = arith.addf %101, %133 : vector<1x128xf32>
    %135 = arith.extui %113 : vector<1x128xi1> to vector<1x128xi32>
    %136 = arith.sitofp %135 : vector<1x128xi32> to vector<1x128xf32>
    %137 = arith.addf %104, %136 : vector<1x128xf32>
    %c0_48 = arith.constant 0 : index
    %c512 = arith.constant 512 : index
    %138 = vector.load %arg2[%c0_48, %c512] : memref<8x1024xf32, #tpu.memory_space<vmem>>, vector<8x128xf32>
    %c4 = arith.constant 4 : index
    %c0_49 = arith.constant 0 : index
    %139 = vector.load %arg3[%c4, %c0_49] : memref<8x128xi32, #tpu.memory_space<vmem>>, vector<1x128xi32>
    %cst_50 = arith.constant dense<0xFF800000> : vector<128xf32>
    %140 = vector.multi_reduction <maximumf>, %138, %cst_50 [0] : vector<8x128xf32> to vector<128xf32>
    %141 = vector.shape_cast %140 : vector<128xf32> to vector<1x128xf32>
    %cst_51 = arith.constant 0xFF800000 : f32
    %142 = vector.broadcast %cst_51 : f32 to vector<1x128xf32>
    %143 = arith.cmpf one, %141, %142 : vector<1x128xf32>
    %c-1_i32_52 = arith.constant -1 : i32
    %144 = vector.broadcast %c-1_i32_52 : i32 to vector<1x128xi32>
    %145 = arith.cmpi ne, %139, %144 : vector<1x128xi32>
    %146 = arith.andi %143, %145 : vector<1x128xi1>
    %cst_53 = arith.constant 0xFF800000 : f32
    %147 = vector.broadcast %cst_53 : f32 to vector<1x128xf32>
    %148 = arith.cmpf oeq, %141, %147 : vector<1x128xf32>
    %cst_54 = arith.constant 0.000000e+00 : f32
    %149 = vector.broadcast %cst_54 : f32 to vector<1x128xf32>
    %150 = arith.select %148, %149, %141 : vector<1x128xi1>, vector<1x128xf32>
    %151 = vector.broadcast %150 : vector<1x128xf32> to vector<8x128xf32>
    %152 = arith.subf %138, %151 : vector<8x128xf32>
    %153 = math.exp %152 : vector<8x128xf32>
    %cst_55 = arith.constant dense<0.000000e+00> : vector<128xf32>
    %154 = vector.multi_reduction <add>, %153, %cst_55 [0] : vector<8x128xf32> to vector<128xf32>
    %155 = vector.shape_cast %154 : vector<128xf32> to vector<1x128xf32>
    %156 = vector.broadcast %3 : vector<8x1xi32> to vector<8x128xi32>
    %157 = vector.broadcast %139 : vector<1x128xi32> to vector<8x128xi32>
    %158 = arith.cmpi eq, %156, %157 : vector<8x128xi32>
    %cst_56 = arith.constant 0.000000e+00 : f32
    %159 = vector.broadcast %cst_56 : f32 to vector<8x128xf32>
    %160 = arith.select %158, %152, %159 : vector<8x128xi1>, vector<8x128xf32>
    %cst_57 = arith.constant dense<0.000000e+00> : vector<128xf32>
    %161 = vector.multi_reduction <add>, %160, %cst_57 [0] : vector<8x128xf32> to vector<128xf32>
    %162 = vector.shape_cast %161 : vector<128xf32> to vector<1x128xf32>
    %163 = math.log %155 : vector<1x128xf32>
    %164 = arith.subf %163, %162 : vector<1x128xf32>
    %cst_58 = arith.constant 0.000000e+00 : f32
    %165 = vector.broadcast %cst_58 : f32 to vector<1x128xf32>
    %166 = arith.select %146, %164, %165 : vector<1x128xi1>, vector<1x128xf32>
    %167 = arith.addf %134, %166 : vector<1x128xf32>
    %168 = arith.extui %146 : vector<1x128xi1> to vector<1x128xi32>
    %169 = arith.sitofp %168 : vector<1x128xi32> to vector<1x128xf32>
    %170 = arith.addf %137, %169 : vector<1x128xf32>
    %c0_59 = arith.constant 0 : index
    %c640 = arith.constant 640 : index
    %171 = vector.load %arg2[%c0_59, %c640] : memref<8x1024xf32, #tpu.memory_space<vmem>>, vector<8x128xf32>
    %c5 = arith.constant 5 : index
    %c0_60 = arith.constant 0 : index
    %172 = vector.load %arg3[%c5, %c0_60] : memref<8x128xi32, #tpu.memory_space<vmem>>, vector<1x128xi32>
    %cst_61 = arith.constant dense<0xFF800000> : vector<128xf32>
    %173 = vector.multi_reduction <maximumf>, %171, %cst_61 [0] : vector<8x128xf32> to vector<128xf32>
    %174 = vector.shape_cast %173 : vector<128xf32> to vector<1x128xf32>
    %cst_62 = arith.constant 0xFF800000 : f32
    %175 = vector.broadcast %cst_62 : f32 to vector<1x128xf32>
    %176 = arith.cmpf one, %174, %175 : vector<1x128xf32>
    %c-1_i32_63 = arith.constant -1 : i32
    %177 = vector.broadcast %c-1_i32_63 : i32 to vector<1x128xi32>
    %178 = arith.cmpi ne, %172, %177 : vector<1x128xi32>
    %179 = arith.andi %176, %178 : vector<1x128xi1>
    %cst_64 = arith.constant 0xFF800000 : f32
    %180 = vector.broadcast %cst_64 : f32 to vector<1x128xf32>
    %181 = arith.cmpf oeq, %174, %180 : vector<1x128xf32>
    %cst_65 = arith.constant 0.000000e+00 : f32
    %182 = vector.broadcast %cst_65 : f32 to vector<1x128xf32>
    %183 = arith.select %181, %182, %174 : vector<1x128xi1>, vector<1x128xf32>
    %184 = vector.broadcast %183 : vector<1x128xf32> to vector<8x128xf32>
    %185 = arith.subf %171, %184 : vector<8x128xf32>
    %186 = math.exp %185 : vector<8x128xf32>
    %cst_66 = arith.constant dense<0.000000e+00> : vector<128xf32>
    %187 = vector.multi_reduction <add>, %186, %cst_66 [0] : vector<8x128xf32> to vector<128xf32>
    %188 = vector.shape_cast %187 : vector<128xf32> to vector<1x128xf32>
    %189 = vector.broadcast %3 : vector<8x1xi32> to vector<8x128xi32>
    %190 = vector.broadcast %172 : vector<1x128xi32> to vector<8x128xi32>
    %191 = arith.cmpi eq, %189, %190 : vector<8x128xi32>
    %cst_67 = arith.constant 0.000000e+00 : f32
    %192 = vector.broadcast %cst_67 : f32 to vector<8x128xf32>
    %193 = arith.select %191, %185, %192 : vector<8x128xi1>, vector<8x128xf32>
    %cst_68 = arith.constant dense<0.000000e+00> : vector<128xf32>
    %194 = vector.multi_reduction <add>, %193, %cst_68 [0] : vector<8x128xf32> to vector<128xf32>
    %195 = vector.shape_cast %194 : vector<128xf32> to vector<1x128xf32>
    %196 = math.log %188 : vector<1x128xf32>
    %197 = arith.subf %196, %195 : vector<1x128xf32>
    %cst_69 = arith.constant 0.000000e+00 : f32
    %198 = vector.broadcast %cst_69 : f32 to vector<1x128xf32>
    %199 = arith.select %179, %197, %198 : vector<1x128xi1>, vector<1x128xf32>
    %200 = arith.addf %167, %199 : vector<1x128xf32>
    %201 = arith.extui %179 : vector<1x128xi1> to vector<1x128xi32>
    %202 = arith.sitofp %201 : vector<1x128xi32> to vector<1x128xf32>
    %203 = arith.addf %170, %202 : vector<1x128xf32>
    %c0_70 = arith.constant 0 : index
    %c768 = arith.constant 768 : index
    %204 = vector.load %arg2[%c0_70, %c768] : memref<8x1024xf32, #tpu.memory_space<vmem>>, vector<8x128xf32>
    %c6 = arith.constant 6 : index
    %c0_71 = arith.constant 0 : index
    %205 = vector.load %arg3[%c6, %c0_71] : memref<8x128xi32, #tpu.memory_space<vmem>>, vector<1x128xi32>
    %cst_72 = arith.constant dense<0xFF800000> : vector<128xf32>
    %206 = vector.multi_reduction <maximumf>, %204, %cst_72 [0] : vector<8x128xf32> to vector<128xf32>
    %207 = vector.shape_cast %206 : vector<128xf32> to vector<1x128xf32>
    %cst_73 = arith.constant 0xFF800000 : f32
    %208 = vector.broadcast %cst_73 : f32 to vector<1x128xf32>
    %209 = arith.cmpf one, %207, %208 : vector<1x128xf32>
    %c-1_i32_74 = arith.constant -1 : i32
    %210 = vector.broadcast %c-1_i32_74 : i32 to vector<1x128xi32>
    %211 = arith.cmpi ne, %205, %210 : vector<1x128xi32>
    %212 = arith.andi %209, %211 : vector<1x128xi1>
    %cst_75 = arith.constant 0xFF800000 : f32
    %213 = vector.broadcast %cst_75 : f32 to vector<1x128xf32>
    %214 = arith.cmpf oeq, %207, %213 : vector<1x128xf32>
    %cst_76 = arith.constant 0.000000e+00 : f32
    %215 = vector.broadcast %cst_76 : f32 to vector<1x128xf32>
    %216 = arith.select %214, %215, %207 : vector<1x128xi1>, vector<1x128xf32>
    %217 = vector.broadcast %216 : vector<1x128xf32> to vector<8x128xf32>
    %218 = arith.subf %204, %217 : vector<8x128xf32>
    %219 = math.exp %218 : vector<8x128xf32>
    %cst_77 = arith.constant dense<0.000000e+00> : vector<128xf32>
    %220 = vector.multi_reduction <add>, %219, %cst_77 [0] : vector<8x128xf32> to vector<128xf32>
    %221 = vector.shape_cast %220 : vector<128xf32> to vector<1x128xf32>
    %222 = vector.broadcast %3 : vector<8x1xi32> to vector<8x128xi32>
    %223 = vector.broadcast %205 : vector<1x128xi32> to vector<8x128xi32>
    %224 = arith.cmpi eq, %222, %223 : vector<8x128xi32>
    %cst_78 = arith.constant 0.000000e+00 : f32
    %225 = vector.broadcast %cst_78 : f32 to vector<8x128xf32>
    %226 = arith.select %224, %218, %225 : vector<8x128xi1>, vector<8x128xf32>
    %cst_79 = arith.constant dense<0.000000e+00> : vector<128xf32>
    %227 = vector.multi_reduction <add>, %226, %cst_79 [0] : vector<8x128xf32> to vector<128xf32>
    %228 = vector.shape_cast %227 : vector<128xf32> to vector<1x128xf32>
    %229 = math.log %221 : vector<1x128xf32>
    %230 = arith.subf %229, %228 : vector<1x128xf32>
    %cst_80 = arith.constant 0.000000e+00 : f32
    %231 = vector.broadcast %cst_80 : f32 to vector<1x128xf32>
    %232 = arith.select %212, %230, %231 : vector<1x128xi1>, vector<1x128xf32>
    %233 = arith.addf %200, %232 : vector<1x128xf32>
    %234 = arith.extui %212 : vector<1x128xi1> to vector<1x128xi32>
    %235 = arith.sitofp %234 : vector<1x128xi32> to vector<1x128xf32>
    %236 = arith.addf %203, %235 : vector<1x128xf32>
    %c0_81 = arith.constant 0 : index
    %c896 = arith.constant 896 : index
    %237 = vector.load %arg2[%c0_81, %c896] : memref<8x1024xf32, #tpu.memory_space<vmem>>, vector<8x128xf32>
    %c7 = arith.constant 7 : index
    %c0_82 = arith.constant 0 : index
    %238 = vector.load %arg3[%c7, %c0_82] : memref<8x128xi32, #tpu.memory_space<vmem>>, vector<1x128xi32>
    %cst_83 = arith.constant dense<0xFF800000> : vector<128xf32>
    %239 = vector.multi_reduction <maximumf>, %237, %cst_83 [0] : vector<8x128xf32> to vector<128xf32>
    %240 = vector.shape_cast %239 : vector<128xf32> to vector<1x128xf32>
    %cst_84 = arith.constant 0xFF800000 : f32
    %241 = vector.broadcast %cst_84 : f32 to vector<1x128xf32>
    %242 = arith.cmpf one, %240, %241 : vector<1x128xf32>
    %c-1_i32_85 = arith.constant -1 : i32
    %243 = vector.broadcast %c-1_i32_85 : i32 to vector<1x128xi32>
    %244 = arith.cmpi ne, %238, %243 : vector<1x128xi32>
    %245 = arith.andi %242, %244 : vector<1x128xi1>
    %cst_86 = arith.constant 0xFF800000 : f32
    %246 = vector.broadcast %cst_86 : f32 to vector<1x128xf32>
    %247 = arith.cmpf oeq, %240, %246 : vector<1x128xf32>
    %cst_87 = arith.constant 0.000000e+00 : f32
    %248 = vector.broadcast %cst_87 : f32 to vector<1x128xf32>
    %249 = arith.select %247, %248, %240 : vector<1x128xi1>, vector<1x128xf32>
    %250 = vector.broadcast %249 : vector<1x128xf32> to vector<8x128xf32>
    %251 = arith.subf %237, %250 : vector<8x128xf32>
    %252 = math.exp %251 : vector<8x128xf32>
    %cst_88 = arith.constant dense<0.000000e+00> : vector<128xf32>
    %253 = vector.multi_reduction <add>, %252, %cst_88 [0] : vector<8x128xf32> to vector<128xf32>
    %254 = vector.shape_cast %253 : vector<128xf32> to vector<1x128xf32>
    %255 = vector.broadcast %3 : vector<8x1xi32> to vector<8x128xi32>
    %256 = vector.broadcast %238 : vector<1x128xi32> to vector<8x128xi32>
    %257 = arith.cmpi eq, %255, %256 : vector<8x128xi32>
    %cst_89 = arith.constant 0.000000e+00 : f32
    %258 = vector.broadcast %cst_89 : f32 to vector<8x128xf32>
    %259 = arith.select %257, %251, %258 : vector<8x128xi1>, vector<8x128xf32>
    %cst_90 = arith.constant dense<0.000000e+00> : vector<128xf32>
    %260 = vector.multi_reduction <add>, %259, %cst_90 [0] : vector<8x128xf32> to vector<128xf32>
    %261 = vector.shape_cast %260 : vector<128xf32> to vector<1x128xf32>
    %262 = math.log %254 : vector<1x128xf32>
    %263 = arith.subf %262, %261 : vector<1x128xf32>
    %cst_91 = arith.constant 0.000000e+00 : f32
    %264 = vector.broadcast %cst_91 : f32 to vector<1x128xf32>
    %265 = arith.select %245, %263, %264 : vector<1x128xi1>, vector<1x128xf32>
    %266 = arith.addf %233, %265 : vector<1x128xf32>
    %267 = arith.extui %245 : vector<1x128xi1> to vector<1x128xi32>
    %268 = arith.sitofp %267 : vector<1x128xi32> to vector<1x128xf32>
    %269 = arith.addf %236, %268 : vector<1x128xf32>
    %c0_92 = arith.constant 0 : index
    %c0_93 = arith.constant 0 : index
    %270 = vector.load %arg6[%c0_92, %c0_93] : memref<1x128xf32, #tpu.memory_space<vmem>>, vector<1x128xf32>
    tpu.vector_store %arg6[%c0_92, %c0_93], %266 {strides = array<i32>} : memref<1x128xf32, #tpu.memory_space<vmem>>, vector<1x128xf32>,
    %c0_94 = arith.constant 0 : index
    %c0_95 = arith.constant 0 : index
    %271 = vector.load %arg7[%c0_94, %c0_95] : memref<1x128xf32, #tpu.memory_space<vmem>>, vector<1x128xf32>
    tpu.vector_store %arg7[%c0_94, %c0_95], %269 {strides = array<i32>} : memref<1x128xf32, #tpu.memory_space<vmem>>, vector<1x128xf32>,
    %c0_i32_96 = arith.constant 0 : i32
    %272 = arith.cmpi eq, %arg1, %c0_i32_96 : i32
    %273 = arith.extui %272 : i1 to i32
    %c0_i32_97 = arith.constant 0 : i32
    %274 = arith.cmpi ne, %273, %c0_i32_97 : i32
    scf.if %274 {
      %c0_98 = arith.constant 0 : index
      %c0_99 = arith.constant 0 : index
      %275 = vector.load %arg6[%c0_98, %c0_99] : memref<1x128xf32, #tpu.memory_space<vmem>>, vector<1x128xf32>
      %276 = vector.shape_cast %275 : vector<1x128xf32> to vector<1x1x128xf32>
      %cst_100 = arith.constant dense<0.000000e+00> : vector<1xf32>
      %277 = vector.multi_reduction <add>, %276, %cst_100 [1, 2] : vector<1x1x128xf32> to vector<1xf32>
      %278 = vector.shape_cast %277 : vector<1xf32> to vector<1x1x1xf32>
      %279 = vector.extract %278[0, 0, 0] : f32 from vector<1x1x1xf32>
      %280 = vector.broadcast %279 : f32 to vector<1x8x128xf32>
      %c0_101 = arith.constant 0 : index
      %c0_102 = arith.constant 0 : index
      %c0_103 = arith.constant 0 : index
      %281 = vector.load %arg4[%c0_101, %c0_102, %c0_103] : memref<1x8x128xf32, #tpu.memory_space<vmem>>, vector<1x8x128xf32>
      tpu.vector_store %arg4[%c0_101, %c0_102, %c0_103], %280 {strides = array<i32>} : memref<1x8x128xf32, #tpu.memory_space<vmem>>, vector<1x8x128xf32>,
      %c0_104 = arith.constant 0 : index
      %c0_105 = arith.constant 0 : index
      %282 = vector.load %arg7[%c0_104, %c0_105] : memref<1x128xf32, #tpu.memory_space<vmem>>, vector<1x128xf32>
      %283 = vector.shape_cast %282 : vector<1x128xf32> to vector<1x1x128xf32>
      %cst_106 = arith.constant dense<0.000000e+00> : vector<1xf32>
      %284 = vector.multi_reduction <add>, %283, %cst_106 [1, 2] : vector<1x1x128xf32> to vector<1xf32>
      %285 = vector.shape_cast %284 : vector<1xf32> to vector<1x1x1xf32>
      %286 = vector.extract %285[0, 0, 0] : f32 from vector<1x1x1xf32>
      %287 = vector.broadcast %286 : f32 to vector<1x8x128xf32>
      %c0_107 = arith.constant 0 : index
      %c0_108 = arith.constant 0 : index
      %c0_109 = arith.constant 0 : index
      %288 = vector.load %arg5[%c0_107, %c0_108, %c0_109] : memref<1x8x128xf32, #tpu.memory_space<vmem>>, vector<1x8x128xf32>
      tpu.vector_store %arg5[%c0_107, %c0_108, %c0_109], %287 {strides = array<i32>} : memref<1x8x128xf32, #tpu.memory_space<vmem>>, vector<1x8x128xf32>,
    } else {
    }
    return
  }
  func.func @transform_0(%arg0: i32, %arg1: i32) -> (i32, i32) {
    %c1_i32 = arith.constant 1 : i32
    %0 = arith.muli %arg0, %c1_i32 : i32
    %1 = arith.addi %0, %arg1 : i32
    %c0_i32 = arith.constant 0 : i32
    %c0_i32_0 = arith.constant 0 : i32
    return %c0_i32, %1 : i32, i32
  }
  func.func @transform_1(%arg0: i32, %arg1: i32) -> (i32, i32) {
    %c1_i32 = arith.constant 1 : i32
    %0 = arith.muli %arg0, %c1_i32 : i32
    %1 = arith.addi %0, %arg1 : i32
    %c0_i32 = arith.constant 0 : i32
    %c0_i32_0 = arith.constant 0 : i32
    return %c0_i32, %1 : i32, i32
  }
  func.func @transform_2(%arg0: i32, %arg1: i32) -> (i32, i32, i32) {
    %c0_i32 = arith.constant 0 : i32
    %c0_i32_0 = arith.constant 0 : i32
    %c0_i32_1 = arith.constant 0 : i32
    return %arg0, %c0_i32, %c0_i32_0 : i32, i32, i32
  }
  func.func @transform_3(%arg0: i32, %arg1: i32) -> (i32, i32, i32) {
    %c0_i32 = arith.constant 0 : i32
    %c0_i32_0 = arith.constant 0 : i32
    %c0_i32_1 = arith.constant 0 : i32
    return %arg0, %c0_i32, %c0_i32_0 : i32, i32, i32
  }
}

</mosaic_0001>

<bundles_post_ra>
// kernel: tpu_custom_call.1
= control target key start
LH: loop header
LB: loop body
LE: loop exit
PB: predicated region body
PF: predicated region fallthrough
CT: control target
= control target key end

     0   :  { %9 = vsyncpa [#allocation5], 0  ;;  %s854_s0 = inlined_call_operand.hbm [shape: f32[8,1024], index: 0, kind: input, shape index: {}]   ;;  %s855_s1 = inlined_call_operand.hbm [shape: s32[8,128], index: 1, kind: input, shape index: {}]   ;;  %s856_s2 = inlined_call_operand.hbm [shape: f32[1,8,128], index: 2, kind: output, shape index: {0}]   ;;  %s857_s3 = inlined_call_operand.hbm [shape: f32[1,8,128], index: 3, kind: output, shape index: {1}]  }
   0x1   :  { %10 = vsyncpa [#allocation8], 0 }
   0x2   :  { %11 = vsyncpa [#allocation6], 0 }
   0x3   :  { %12 = vsyncpa [#allocation11], 0  ;;  %s22_s14 = sshll.u32 %s854_s0, 4  ;;  %s602_s15 = smov [#allocation4]   ;;  %s23_s14 = int_to_ptr.hbm [resolvable:$true] %s22_s14 }
   0x4   :  { %s24_s16 = sshll.u32 %s602_s15, 4  ;;  %s36_s19 = sshll.u32 %s855_s1, 4  ;;  %s25_s16 = int_to_ptr.vmem [resolvable:$true] %s24_s16  ;;  %s37_s19 = int_to_ptr.hbm [resolvable:$true] %s36_s19 }
   0x5   :  { %27 = dma.hbm_to_vmem [thread:$0]  %s23_s14, 1024, %s25_s16, [#allocation5]  }
   0x6   :  { %s603_s20 = smov [#allocation7]  }
   0x7   :  { %s38_s21 = sshll.u32 %s603_s20, 4  ;;  %s39_s21 = int_to_ptr.vmem [resolvable:$true] %s38_s21 }
   0x8   :  { %41 = dma.hbm_to_vmem [thread:$0]  %s37_s19, 128, %s39_s21, [#allocation8]  }
   0x9   :  { %594 = dma.done.wait [#allocation5], 1024  }
   0xa   :  { %595 = vsyncadd [#allocation5], 4294966272 }
   0xb   :  { %596 = dma.done.wait [#allocation8], 128  }
   0xc   :  { %597 = vsyncadd [#allocation8], 4294967168  ;;  %v604_v0 = vmov 0.0   ;;  %v63_v1 = vld [vmem:[#allocation4] sm:$0xff]  ;;  %v102_v3 = vld [vmem:[#allocation4 + $0x8] sm:$0xff]  ;;  %v59_v34 = vlaneseq  ;;  %s605_s0 = smov [#allocation9]  }
   0xd   :  { %57 = vst [vmem:[#allocation2] sm:$0x1] %v604_v0  ;;  %v65_v2 = vrot.slane %v63_v1, 4  ;;  %v141_v4 = vld [vmem:[#allocation4 + $0x10] sm:$0xff]  ;;  %v104_v5 = vrot.slane %v102_v3, 4  ;;  %v180_v7 = vld [vmem:[#allocation4 + $0x18] sm:$0xff] }
   0xe   :  { %58 = vst [vmem:[#allocation3] sm:$0x1] %v604_v0  ;;  %v143_v6 = vrot.slane %v141_v4, 4  ;;  %v635_v8 = vld [vmem:[#allocation4 + $0x20] sm:$0xff]  ;;  %v182_v10 = vrot.slane %v180_v7, 4  ;;  %v638_v12 = vld [vmem:[#allocation4 + $0x28] sm:$0xff] }
   0xf   :  { %v66_v9 = vmax.f32 %v63_v1, %v65_v2  ;;  %v221_v11 = vrot.slane %v635_v8, 4  ;;  %v105_v13 = vmax.f32 %v102_v3, %v104_v5  ;;  %v260_v20 = vrot.slane %v638_v12, 4  ;;  %v458_v45 = vld [vmem:[#allocation7] ss:$0 sm:$0xff]  ;;  %v459_v53 = vld [vmem:[#allocation7 + $0x1] ss:$0 sm:$0xff] }
  0x10   :  { %v144_v14 = vmax.f32 %v141_v4, %v143_v6  ;;  %v183_v16 = vmax.f32 %v180_v7, %v182_v10  ;;  %v658_v44 = vshrl.u32 %v59_v34, 7  ;;  %v460_v54 = vld [vmem:[#allocation7 + $0x2] ss:$0 sm:$0xff]  ;;  %v461_v57 = vld [vmem:[#allocation7 + $0x3] ss:$0 sm:$0xff]  ;;  %v665_v58 = vld [vmem:[#allocation4 + $0x30] sm:$0xff] }
  0x11   :  { %v67_v15 = vrot.slane %v66_v9, 2  ;;  %v222_v17 = vmax.f32 %v635_v8, %v221_v11  ;;  %v106_v18 = vrot.slane %v105_v13, 2  ;;  %v261_v31 = vmax.f32 %v638_v12, %v260_v20  ;;  %v462_v63 = vld [vmem:[#allocation7 + $0x4] ss:$0 sm:$0xff]  ;;  %s412_s1 = sshll.u32 %s605_s0, 4  ;;  %s414_s24 = sshll.u32 %s856_s2, 4  ;;  %s413_s1 = int_to_ptr.vmem [resolvable:$true] %s412_s1  ;;  %s415_s24 = int_to_ptr.hbm [resolvable:$true] %s414_s24 }
  0x12   :  { %v145_v19 = vrot.slane %v144_v14, 2  ;;  %v184_v22 = vrot.slane %v183_v16, 2  ;;  %vm86_vm4 = vcmp.eq.s32.totalorder %v658_v44, %v458_v45  ;;  %vm125_vm6 = vcmp.eq.s32.totalorder %v658_v44, %v459_v53  ;;  %s606_s26 = smov [#allocation10]   ;;  %s425_s30 = sshll.u32 %s857_s3, 4  ;;  %s426_s30 = int_to_ptr.hbm [resolvable:$true] %s425_s30 }
  0x13   :  { %v68_v21 = vmax.f32 %v66_v9, %v67_v15  ;;  %v223_v23 = vrot.slane %v222_v17, 2  ;;  %v107_v24 = vmax.f32 %v105_v13, %v106_v18  ;;  %v262_v40 = vrot.slane %v261_v31, 2  ;;  %s423_s27 = sshll.u32 %s606_s26, 4  ;;  %s424_s27 = int_to_ptr.vmem [resolvable:$true] %s423_s27 }
  0x14   :  { %v146_v25 = vmax.f32 %v144_v14, %v145_v19  ;;  %v185_v27 = vmax.f32 %v183_v16, %v184_v22  ;;  %vm164_vm7 = vcmp.eq.s32.totalorder %v658_v44, %v460_v54  ;;  %vm203_vm8 = vcmp.eq.s32.totalorder %v658_v44, %v461_v57 }
  0x15   :  { %v69_v26 = vrot.slane %v68_v21, 1  ;;  %v224_v28 = vmax.f32 %v222_v17, %v223_v23  ;;  %v108_v29 = vrot.slane %v107_v24, 1  ;;  %v263_v55 = vmax.f32 %v261_v31, %v262_v40 }
  0x16   :  { %v147_v30 = vrot.slane %v146_v25, 1  ;;  %v186_v33 = vrot.slane %v185_v27, 1  ;;  %vm242_vm9 = vcmp.eq.s32.totalorder %v658_v44, %v462_v63 }
  0x17   :  { %v643_v32 = vmax.f32 %v68_v21, %v69_v26  ;;  %v645_v35 = vmax.f32 %v107_v24, %v108_v29  ;;  %v225_v38 = vrot.slane %v224_v28, 1  ;;  %v264_v61 = vrot.slane %v263_v55, 1  ;;  %v677_v21 = vld [vmem:[#allocation4 + $0x38] sm:$0xff] }
  0x18   :  { %v647_v36 = vmax.f32 %v146_v25, %v147_v30  ;;  %v650_v37 = vmax.f32 %v185_v27, %v186_v33  ;;  %v338_v33 = vrot.slane %v677_v21, 4 }
  0x19   :  { %vm74_vm0 = vcmp.eq.f32.partialorder %v643_v32, -inf  ;;  %vm113_vm1 = vcmp.eq.f32.partialorder %v645_v35, -inf  ;;  %v661_v50 = vmax.f32 %v224_v28, %v225_v38  ;;  %v673_v13 = vmax.f32 %v263_v55, %v264_v61  ;;  %v686_v61 = vld [vmem:[#allocation7] sm:$0x1] }
  0x1a   :  { %v75_v39 = vsel %vm74_vm0, 0.0, %v643_v32  ;;  %vm152_vm2 = vcmp.eq.f32.partialorder %v647_v36, -inf  ;;  %v114_v42 = vsel %vm113_vm1, 0.0, %v645_v35  ;;  %vm191_vm3 = vcmp.eq.f32.partialorder %v650_v37, -inf }
  0x1b   :  { %v76_v41 = vsub.f32 %v63_v1, %v75_v39  ;;  %v153_v43 = vsel %vm152_vm2, 0.0, %v647_v36  ;;  %v115_v46 = vsub.f32 %v102_v3, %v114_v42  ;;  %v192_v48 = vsel %vm191_vm3, 0.0, %v650_v37 }
  0x1c   :  { %v154_v47 = vsub.f32 %v141_v4, %v153_v43  ;;  %v193_v52 = vsub.f32 %v180_v7, %v192_v48  ;;  %vm230_vm5 = vcmp.eq.f32.partialorder %v661_v50, -inf  ;;  %v299_v1 = vrot.slane %v665_v58, 4 }
  0x1d   :  { %v77_v49 = vmul.f32 1.442695, %v76_v41  ;;  %v116_v51 = vmul.f32 1.442695, %v115_v46  ;;  %v87_v60 = vsel %vm86_vm4, %v76_v41, 0.0  ;;  %v231_v62 = vsel %vm230_vm5, 0.0, %v661_v50 }
  0x1e   :  { %v155_v56 = vmul.f32 1.442695, %v154_v47  ;;  %v194_v59 = vmul.f32 1.442695, %v193_v52  ;;  %v232_v3 = vsub.f32 %v635_v8, %v231_v62  ;;  %v88_v6 = vrot.slane %v87_v60, 4 }
  0x1f   :  { %466 = vpow2.f32 %v77_v49  ;;  %v126_v7 = vsel %vm125_vm6, %v115_v46, 0.0  ;;  %v165_v9 = vsel %vm164_vm7, %v154_v47, 0.0  ;;  %v204_v11 = vsel %vm203_vm8, %v193_v52, 0.0  ;;  %v463_v46 = vld [vmem:[#allocation7 + $0x5] ss:$0 sm:$0xff] }
  0x20   :  { %468 = vpow2.f32 %v116_v51  ;;  %v233_v16 = vmul.f32 1.442695, %v232_v3  ;;  %v300_v17 = vmax.f32 %v665_v58, %v299_v1  ;;  %v127_v19 = vrot.slane %v126_v7, 4 }
  0x21   :  { %470 = vpow2.f32 %v155_v56  ;;  %v166_v8 = vrot.slane %v165_v9, 4  ;;  %v89_v24 = vadd.f32 %v88_v6, %v87_v60  ;;  %v205_v25 = vrot.slane %v204_v11, 4 }
  0x22   :  { %472 = vpow2.f32 %v194_v59  ;;  %vm269_vm10 = vcmp.eq.f32.partialorder %v673_v13, -inf  ;;  %v243_v30 = vsel %vm242_vm9, %v232_v3, 0.0  ;;  %v301_v31 = vrot.slane %v300_v17, 2 }
  0x23   :  { %474 = vpow2.f32 %v233_v16  ;;  %v128_v38 = vadd.f32 %v127_v19, %v126_v7  ;;  %v167_v40 = vadd.f32 %v166_v8, %v165_v9  ;;  %v90_v42 = vrot.slane %v89_v24, 2  ;;  %v691_v7 = vld [vmem:[#allocation7 + $0x1] sm:$0x1] }
  0x24   :  { %v270_v45 = vsel %vm269_vm10, 0.0, %v673_v13  ;;  %v206_v47 = vadd.f32 %v205_v25, %v204_v11  ;;  %v244_v48 = vrot.slane %v243_v30, 4  ;;  %v302_v55 = vmax.f32 %v300_v17, %v301_v31 }
  0x25   :  { %v467_v2 = vpop.eup %466  ;;  %v271_v49 = vsub.f32 %v638_v12, %v270_v45  ;;  %v129_v56 = vrot.slane %v128_v38, 2  ;;  %v168_v57 = vrot.slane %v167_v40, 2  ;;  %v339_v60 = vmax.f32 %v677_v21, %v338_v33  ;;  %v707_v33 = vld [vmem:[#allocation7 + $0x4] sm:$0x1] }
  0x26   :  { %v469_v4 = vpop.eup %468  ;;  %v79_v5 = vrot.slane %v467_v2, 4  ;;  %v91_v62 = vadd.f32 %v90_v42, %v89_v24  ;;  %vm281_vm11 = vcmp.eq.s32.totalorder %v658_v44, %v463_v46  ;;  %v245_v3 = vadd.f32 %v244_v48, %v243_v30 }
  0x27   :  { %v118_v10 = vrot.slane %v469_v4, 4  ;;  %v471_v14 = vpop.eup %470  ;;  %v272_v1 = vmul.f32 1.442695, %v271_v49  ;;  %v303_v6 = vrot.slane %v302_v55, 1  ;;  %vm71_vm12 = vcmp.ne.f32.partialorder %v643_v32, -inf }
  0x28   :  { %v80_v15 = vadd.f32 %v467_v2, %v79_v5  ;;  %v157_v20 = vrot.slane %v471_v14, 4  ;;  %v473_v22 = vpop.eup %472  ;;  %v207_v2 = vrot.slane %v206_v47, 2  ;;  %vm72_vm13 = vcmp.ne.s32.totalorder %v686_v61, 4294967295 }
  0x29   :  { %v119_v18 = vadd.f32 %v469_v4, %v118_v10  ;;  %v196_v28 = vrot.slane %v473_v22, 4  ;;  %v475_v51 = vpop.eup %474  ;;  %v130_v9 = vadd.f32 %v129_v56, %v128_v38  ;;  %v169_v10 = vadd.f32 %v168_v57, %v167_v40  ;;  %v465_v56 = vld [vmem:[#allocation7 + $0x7] ss:$0 sm:$0xff]  ;;  %vm733_vm10 = vmand %vm71_vm12, %vm72_vm13 }
  0x2a   :  { %v81_v23 = vrot.slane %v80_v15, 2  ;;  %v158_v27 = vadd.f32 %v471_v14, %v157_v20  ;;  %v235_v59 = vrot.slane %v475_v51, 4  ;;  %v92_v11 = vrot.slane %v91_v62, 1  ;;  %v693_v14 = vld [vmem:[#allocation7 + $0x2] sm:$0x1] }
  0x2b   :  { %v120_v26 = vrot.slane %v119_v18, 2  ;;  %v197_v43 = vadd.f32 %v473_v22, %v196_v28  ;;  %v695_v16 = vmax.f32 %v302_v55, %v303_v6  ;;  %v340_v17 = vrot.slane %v339_v60, 2 }
  0x2c   :  { %v82_v29 = vadd.f32 %v81_v23, %v80_v15  ;;  %v159_v39 = vrot.slane %v158_v27, 2  ;;  %v236_v12 = vadd.f32 %v475_v51, %v235_v59  ;;  %v246_v20 = vrot.slane %v245_v3, 2 }
  0x2d   :  { %v121_v34 = vadd.f32 %v120_v26, %v119_v18  ;;  %v198_v63 = vrot.slane %v197_v43, 2  ;;  %v208_v18 = vadd.f32 %v207_v2, %v206_v47  ;;  %v282_v8 = vsel %vm281_vm11, %v271_v49, 0.0 }
  0x2e   :  { %v83_v41 = vrot.slane %v82_v29, 1  ;;  %v160_v54 = vadd.f32 %v159_v39, %v158_v27  ;;  %v237_v19 = vrot.slane %v236_v12, 2  ;;  %vm110_vm14 = vcmp.ne.f32.partialorder %v645_v35, -inf  ;;  %v704_v27 = vld [vmem:[#allocation7 + $0x3] sm:$0x1] }
  0x2f   :  { %v122_v53 = vrot.slane %v121_v34, 1  ;;  %v199_v15 = vadd.f32 %v198_v63, %v197_v43  ;;  %vm111_vm15 = vcmp.ne.s32.totalorder %v691_v7, 4294967295  ;;  %vm308_vm0 = vcmp.eq.f32.partialorder %v695_v16, -inf  ;;  %v464_v39 = vld [vmem:[#allocation7 + $0x6] ss:$0 sm:$0xff] }
  0x30   :  { %v84_v52 = vadd.f32 %v83_v41, %v82_v29  ;;  %v161_v5 = vrot.slane %v160_v54, 1  ;;  %v341_v23 = vmax.f32 %v339_v60, %v340_v17  ;;  %v131_v25 = vrot.slane %v130_v9, 1  ;;  %v712_v43 = vld [vmem:[#allocation7 + $0x5] sm:$0x1] }
  0x31   :  { %v123_v4 = vadd.f32 %v122_v53, %v121_v34  ;;  %vm149_vm1 = vcmp.ne.f32.partialorder %v647_v36, -inf  ;;  %vm150_vm2 = vcmp.ne.s32.totalorder %v693_v14, 4294967295  ;;  %v170_v26 = vrot.slane %v169_v10, 1 }
  0x32   :  { %476 = vlog2.f32 %v84_v52  ;;  %v162_v22 = vadd.f32 %v161_v5, %v160_v54  ;;  %v309_v28 = vsel %vm308_vm0, 0.0, %v695_v16  ;;  %v93_v30 = vadd.f32 %v92_v11, %v91_v62  ;;  %v722_v52 = vld [vmem:[#allocation7 + $0x6] sm:$0x1]  ;;  %vm750_vm0 = vmand %vm110_vm14, %vm111_vm15 }
  0x33   :  { %478 = vpow2.f32 %v272_v1  ;;  %v200_v31 = vrot.slane %v199_v15, 1  ;;  %v283_v34 = vrot.slane %v282_v8, 4  ;;  %v310_v38 = vsub.f32 %v665_v58, %v309_v28  ;;  %v337_v28 = vld [vmem:[#allocation7 + $0x7] sm:$0x1] }
  0x34   :  { %480 = vlog2.f32 %v123_v4  ;;  %v209_v40 = vrot.slane %v208_v18, 1  ;;  %v238_v41 = vadd.f32 %v237_v19, %v236_v12  ;;  %v710_v42 = vadd.f32 %v246_v20, %v245_v3  ;;  %v62_v12 = vld [vmem:[#allocation3] sm:$0x1] }
  0x35   :  { %482 = vlog2.f32 %v162_v22  ;;  %vm188_vm3 = vcmp.ne.f32.partialorder %v650_v37, -inf  ;;  %vm189_vm4 = vcmp.ne.s32.totalorder %v704_v27, 4294967295  ;;  %v311_v47 = vmul.f32 1.442695, %v310_v38 }
  0x36   :  { %v342_v48 = vrot.slane %v341_v23, 1  ;;  %v716_v49 = vadd.f32 %v131_v25, %v130_v9  ;;  %v718_v51 = vadd.f32 %v170_v26, %v169_v10  ;;  %vm227_vm5 = vcmp.ne.f32.partialorder %v661_v50, -inf  ;;  %vm778_vm15 = vmand %vm188_vm3, %vm189_vm4 }
  0x37   :  { %vm228_vm6 = vcmp.ne.s32.totalorder %v707_v33, 4294967295  ;;  %v201_v54 = vadd.f32 %v200_v31, %v199_v15  ;;  %vm266_vm7 = vcmp.ne.f32.partialorder %v673_v13, -inf  ;;  %vm267_vm8 = vcmp.ne.s32.totalorder %v712_v43, 4294967295 }
  0x38   :  { %v477_v24 = vpop.eup %476  ;;  %v284_v55 = vadd.f32 %v283_v34, %v282_v8  ;;  %vm320_vm9 = vcmp.eq.s32.totalorder %v658_v44, %v464_v39  ;;  %v727_v57 = vadd.f32 %v209_v40, %v208_v18  ;;  %v239_v59 = vrot.slane %v238_v41, 1  ;;  %v61_v18 = vld [vmem:[#allocation2] sm:$0x1] }
  0x39   :  { %v479_v29 = vpop.eup %478  ;;  %v95_v46 = vmul.f32 0.6931472, %v477_v24  ;;  %484 = vpow2.f32 %v311_v47  ;;  %v248_v1 = vrot.slane %v710_v42, 1  ;;  %vm306_vm11 = vcmp.ne.s32.totalorder %v722_v52, 4294967295 }
  0x3a   :  { %v274_v45 = vrot.slane %v479_v29, 4  ;;  %v481_v53 = vpop.eup %480  ;;  %v739_v2 = vmax.f32 %v341_v23, %v342_v48  ;;  %v321_v5 = vsel %vm320_vm9, %v310_v38, 0.0  ;;  %v441_v61 = vsel %vm733_vm10, 1.0, %v604_v0  ;;  %vm761_vm9 = vmand %vm149_vm1, %vm150_vm2 }
  0x3b   :  { %v96_v63 = vsub.f32 %v95_v46, %v93_v30  ;;  %v134_v3 = vmul.f32 0.6931472, %v481_v53  ;;  %v483_v32 = vpop.eup %482  ;;  %486 = vlog2.f32 %v201_v54  ;;  %v285_v6 = vrot.slane %v284_v55, 2  ;;  %vm786_vm1 = vmand %vm227_vm5, %vm228_vm6 }
  0x3c   :  { %v275_v58 = vadd.f32 %v479_v29, %v274_v45  ;;  %vm347_vm12 = vcmp.eq.f32.partialorder %v739_v2, -inf  ;;  %vm359_vm13 = vcmp.eq.s32.totalorder %v658_v44, %v465_v56  ;;  %v240_v10 = vadd.f32 %v239_v59, %v238_v41  ;;  %vm799_vm2 = vmand %vm266_vm7, %vm267_vm8 }
  0x3d   :  { %v348_v15 = vsel %vm347_vm12, 0.0, %v739_v2  ;;  %v101_v17 = vadd.f32 %v441_v61, %v62_v12  ;;  %v97_v19 = vsel %vm733_vm10, %v96_v63, 0.0  ;;  %v322_v35 = vrot.slane %v321_v5, 4 }
  0x3e   :  { %v276_v60 = vrot.slane %v275_v58, 2  ;;  %v349_v20 = vsub.f32 %v677_v21, %v348_v15  ;;  %v442_v8 = vsel %vm750_vm0, 1.0, %v604_v0  ;;  %v135_v23 = vsub.f32 %v134_v3, %v716_v49 }
  0x3f   :  { %v485_v22 = vpop.eup %484  ;;  %v173_v24 = vmul.f32 0.6931472, %v483_v32  ;;  %v140_v25 = vadd.f32 %v442_v8, %v101_v17  ;;  %v443_v36 = vsel %vm761_vm9, 1.0, %v604_v0  ;;  %v286_v14 = vadd.f32 %v285_v6, %v284_v55 }
  0x40   :  { %v277_v4 = vadd.f32 %v276_v60, %v275_v58  ;;  %vm305_vm14 = vcmp.ne.f32.partialorder %v695_v16, -inf  ;;  %v313_v26 = vrot.slane %v485_v22, 4  ;;  %v350_v29 = vmul.f32 1.442695, %v349_v20 }
  0x41   :  { %v98_v21 = vadd.f32 %v97_v19, %v61_v18  ;;  %488 = vlog2.f32 %v240_v10  ;;  %v179_v34 = vadd.f32 %v443_v36, %v140_v25  ;;  %v487_v38 = vpop.eup %486  ;;  %v323_v27 = vadd.f32 %v322_v35, %v321_v5  ;;  %vm817_vm5 = vmand %vm305_vm14, %vm306_vm11 }
  0x42   :  { %v278_v11 = vrot.slane %v277_v4, 1  ;;  %v314_v40 = vadd.f32 %v485_v22, %v313_v26  ;;  %490 = vpow2.f32 %v350_v29  ;;  %v444_v37 = vsel %vm778_vm15, 1.0, %v604_v0 }
  0x43   :  { %v136_v41 = vsel %vm750_vm0, %v135_v23, 0.0  ;;  %vm345_vm3 = vcmp.ne.s32.totalorder %v337_v28, 4294967295  ;;  %v360_v33 = vsel %vm359_vm13, %v349_v20, 0.0  ;;  %v218_v45 = vadd.f32 %v444_v37, %v179_v34 }
  0x44   :  { %v279_v31 = vadd.f32 %v278_v11, %v277_v4  ;;  %v315_v46 = vrot.slane %v314_v40, 2  ;;  %vm344_vm4 = vcmp.ne.f32.partialorder %v739_v2, -inf  ;;  %v445_v47 = vsel %vm786_vm1, 1.0, %v604_v0 }
  0x45   :  { %v446_v13 = vsel %vm799_vm2, 1.0, %v604_v0  ;;  %v174_v43 = vsub.f32 %v173_v24, %v718_v51  ;;  %v212_v48 = vmul.f32 0.6931472, %v487_v38  ;;  %v257_v49 = vadd.f32 %v445_v47, %v218_v45  ;;  %vm828_vm6 = vmand %vm344_vm4, %vm345_vm3 }
  0x46   :  { %492 = vlog2.f32 %v279_v31  ;;  %v316_v58 = vadd.f32 %v315_v46, %v314_v40  ;;  %v324_v53 = vrot.slane %v323_v27, 2  ;;  %v361_v54 = vrot.slane %v360_v33, 4 }
  0x47   :  { %v447_v55 = vsel %vm817_vm5, 1.0, %v604_v0  ;;  %v489_v56 = vpop.eup %488  ;;  %v249_v51 = vadd.f32 %v248_v1, %v710_v42  ;;  %v296_v52 = vadd.f32 %v446_v13, %v257_v49  ;;  %v137_v60 = vadd.f32 %v136_v41, %v98_v21 }
  0x48   :  { %v491_v59 = vpop.eup %490  ;;  %v287_v62 = vrot.slane %v286_v14, 1  ;;  %v317_v63 = vrot.slane %v316_v58, 1  ;;  %v448_v2 = vsel %vm828_vm6, 1.0, %v604_v0  ;;  %v175_v12 = vsel %vm761_vm9, %v174_v43, 0.0 }
  0x49   :  { %v213_v3 = vsub.f32 %v212_v48, %v727_v57  ;;  %v352_v42 = vrot.slane %v491_v59, 4  ;;  %v335_v1 = vadd.f32 %v447_v55, %v296_v52  ;;  %v251_v4 = vmul.f32 0.6931472, %v489_v56 }
  0x4a   :  { %v318_v5 = vadd.f32 %v317_v63, %v316_v58  ;;  %v325_v61 = vadd.f32 %v324_v53, %v323_v27  ;;  %v362_v32 = vadd.f32 %v361_v54, %v360_v33  ;;  %v176_v11 = vadd.f32 %v175_v12, %v137_v60 }
  0x4b   :  { %v353_v9 = vadd.f32 %v491_v59, %v352_v42  ;;  %v374_v10 = vadd.f32 %v448_v2, %v335_v1  ;;  %v214_v15 = vsel %vm778_vm15, %v213_v3, 0.0  ;;  %v288_v0 = vadd.f32 %v287_v62, %v286_v14 }
  0x4c   :  { %v493_v6 = vpop.eup %492  ;;  %494 = vlog2.f32 %v318_v5  ;;  %v252_v18 = vsub.f32 %v251_v4, %v249_v51  ;;  %v326_v57 = vrot.slane %v325_v61, 1  ;;  %v363_v7 = vrot.slane %v362_v32, 2 }
  0x4d   :  { %v354_v17 = vrot.slane %v353_v9, 2  ;;  %376 = vst [vmem:[#allocation3] sm:$0x1] %v374_v10  ;;  %v290_v19 = vmul.f32 0.6931472, %v493_v6  ;;  %v215_v20 = vadd.f32 %v214_v15, %v176_v11  ;;  %vm381_vm7 = vcmask 1040384  }
  0x4e   :  { %v253_v23 = vsel %vm786_vm1, %v252_v18, 0.0  ;;  %v327_v25 = vadd.f32 %v326_v57, %v325_v61  ;;  %v364_v36 = vadd.f32 %v363_v7, %v362_v32 }
  0x4f   :  { %v355_v35 = vadd.f32 %v354_v17, %v353_v9  ;;  %v291_v24 = vsub.f32 %v290_v19, %v288_v0  ;;  %v254_v29 = vadd.f32 %v253_v23, %v215_v20 }
  0x50   :  { %v365_v30 = vrot.slane %v364_v36, 1 }
  0x51   :  { %v356_v8 = vrot.slane %v355_v35, 1  ;;  %v292_v14 = vsel %vm799_vm2, %v291_v24, 0.0 }
  0x52   :  { %v495_v22 = vpop.eup %494  ;;  %v293_v31 = vadd.f32 %v292_v14, %v254_v29  ;;  %v366_v38 = vadd.f32 %v365_v30, %v364_v36 }
  0x53   :  { %v329_v26 = vmul.f32 0.6931472, %v495_v22  ;;  %v357_v28 = vadd.f32 %v356_v8, %v355_v35 }
  0x54   :  { %v394_v46 = vld [vmem:[#allocation3] sm:$0x1] }
  0x55   :  { %496 = vlog2.f32 %v357_v28  ;;  %v330_v21 = vsub.f32 %v329_v26, %v327_v25  ;;  %v395_v47 = vsel %vm381_vm7, %v394_v46, 0.0 }
  0x57   :  { %v331_v34 = vsel %vm817_vm5, %v330_v21, 0.0 }
  0x58   :  { %v332_v27 = vadd.f32 %v331_v34, %v293_v31 }
  0x5b   :  { %v497_v40 = vpop.eup %496 }
  0x5c   :  { %v368_v39 = vmul.f32 0.6931472, %v497_v40 }
  0x5e   :  { %v369_v37 = vsub.f32 %v368_v39, %v366_v38 }
  0x60   :  { %v370_v41 = vsel %vm828_vm6, %v369_v37, 0.0 }
  0x61   :  { %v371_v33 = vadd.f32 %v370_v41, %v332_v27 }
  0x63   :  { %375 = vst [vmem:[#allocation2] sm:$0x1] %v371_v33 }
  0x6a   :  { %v380_v45 = vld [vmem:[#allocation2] sm:$0x1] }
  0x6b   :  { %v382_v50 = vsel %vm381_vm7, %v380_v45, 0.0 }
  0x6c   :  { %383 = vadd.xlane.f32.xlu0 %v382_v50 }
  0x74   :  { %396 = vadd.xlane.f32.xlu0 %v395_v47 }
  0xdf   :  { %v384_v13 = vpop.xlane.xlu0 %383 }
  0xe0   :  { %v385_v43 = vrot.slane %v384_v13, 4 }
  0xe2   :  { %v386_v48 = vadd.f32 %v385_v43, %v384_v13 }
  0xe4   :  { %v387_v44 = vrot.slane %v386_v48, 2 }
  0xe6   :  { %v388_v49 = vadd.f32 %v387_v44, %v386_v48 }
  0xe7   :  { %v397_v58 = vpop.xlane.xlu0 %396 }
  0xe8   :  { %v398_v53 = vrot.slane %v397_v58, 4  ;;  %v389_v54 = vrot.slane %v388_v49, 1 }
  0xea   :  { %v399_v55 = vadd.f32 %v398_v53, %v397_v58  ;;  %v390_v56 = vadd.f32 %v389_v54, %v388_v49 }
  0xec   :  { %v400_v51 = vrot.slane %v399_v55, 2  ;;  %449 = vpush %v390_v56 }
  0xee   :  { %v401_v16 = vadd.f32 %v400_v51, %v399_v55 }
  0xf0   :  { %v402_v52 = vrot.slane %v401_v16, 1 }
  0xf2   :  { %v403_v59 = vadd.f32 %v402_v52, %v401_v16 }
  0xf4   :  { %451 = vpush %v403_v59 }
 0x11d   :  { %s450_s25 = spop %449 }
 0x11e   :  { %v392_v60 = vstv %s450_s25 }
 0x11f   :  { %393 = vst [vmem:[#allocation9] sm:$0xff] %v392_v60 }
 0x120   :  { %417 = dma.vmem_to_hbm [thread:$0]  %s413_s1, 128, %s415_s24, [#allocation6]  }
 0x125   :  { %s452_s4 = spop %451 }
 0x126   :  { %v405_v62 = vstv %s452_s4 }
 0x127   :  { %406 = vst [vmem:[#allocation10] sm:$0xff] %v405_v62 }
 0x128   :  { %428 = dma.vmem_to_hbm [thread:$0]  %s424_s27, 128, %s426_s30, [#allocation11]  }
 0x129   :  { %598 = dma.done.wait [#allocation6], 128  }
 0x12a   :  { %599 = vsyncadd [#allocation6], 4294967168 }
 0x12b   :  { %600 = dma.done.wait [#allocation11], 128  }
 0x12c   :  { %601 = vsyncadd [#allocation11], 4294967168 }
 0x12d   :  { %437 = vsyncpa [#allocation5], 1 }
 0x12e   :  { %438 = vsyncpa [#allocation8], 1 }
 0x12f   :  { %439 = vsyncpa [#allocation6], 1 }
 0x130   :  { %440 = vsyncpa [#allocation11], 1 }

</bundles_post_ra>
